<compile_context>
chip_gen: v6e
topology: v6e:2x2x1
jax: 0.10.0
libtpu: 0.0.40
codegen_flags: <defaults>
</compile_context>

<pallas_src>
import functools
import math

import jax
import jax.numpy as jnp
from jax.experimental import pallas as pl
from jax.experimental.pallas import tpu as pltpu


def _ffn_kernel(x_ref, scale_ref, shift_ref, w1_ref, b1_ref, w2_ref, b2_ref,
                o_ref):
    x = x_ref[0].astype(jnp.float32)                       # (tile, D)
    d = x.shape[-1]

    # --- one-pass LayerNorm statistics over the feature (lane) axis, f32 ---
    s1 = jnp.sum(x, axis=-1, keepdims=True)
    s2 = jnp.sum(x * x, axis=-1, keepdims=True)
    mean = s1 * (1.0 / d)
    var = jnp.maximum(s2 * (1.0 / d) - mean * mean, 0.0)
    xn = (x - mean) * jax.lax.rsqrt(var + 1e-5)

    # --- folded affine + time modulation (per-batch (1, D), broadcast) ---
    xn = xn * scale_ref[0] + shift_ref[0]

    # --- MLP: Linear -> GELU (exact, erf) -> Linear; bf16 MXU, f32 accum ---
    h = jnp.dot(xn.astype(jnp.bfloat16), w1_ref[...],
                preferred_element_type=jnp.float32)
    h = h + b1_ref[...]
    h = 0.5 * h * (1.0 + jax.lax.erf(h * (1.0 / math.sqrt(2.0))))
    y = jnp.dot(h.astype(jnp.bfloat16), w2_ref[...],
                preferred_element_type=jnp.float32)
    y = y + b2_ref[...]

    o_ref[0] = y.astype(o_ref.dtype)


@functools.partial(jax.jit, static_argnames=("row_tile",))
def feed_forward(x, scale, shift, gamma, beta, w1, b1, w2, b2, *,
                 row_tile=512):
    """x: (B, N, D); scale/shift: (B, 1, D); weights stored as (in, out).

    Pass w1/w2 already in bf16 (cast once at setup); biases stay f32.
    """
    B, N, D = x.shape
    inner = w1.shape[-1]

    # ---- glue: fold LayerNorm affine into the per-batch modulation ----
    #   (xhat*gamma + beta) * (scale+1) + shift
    # = xhat * [gamma*(scale+1)] + [beta*(scale+1) + shift]
    # Tiny (B, 1, D) ops; never expanded per row.
    scale_eff = (gamma * (scale + 1.0)).astype(jnp.float32)       # (B, 1, D)
    shift_eff = (beta * (scale + 1.0) + shift).astype(jnp.float32)

    # Weights should arrive pre-cast to bf16 (hoisted out of the hot path);
    # this is a trace-time dtype check, so no cast op is emitted when they do.
    if w1.dtype != jnp.bfloat16:
        w1 = w1.astype(jnp.bfloat16)
    if w2.dtype != jnp.bfloat16:
        w2 = w2.astype(jnp.bfloat16)

    # Row tile within one batch: multiple of 8 sublanes; pad N if needed.
    tile = max(8, min(row_tile, ((N + 7) // 8) * 8))
    tile = (tile // 8) * 8
    n_p = ((N + tile - 1) // tile) * tile
    if n_p != N:
        x = jnp.pad(x, ((0, 0), (0, n_p - N), (0, 0)))
    n_tiles = n_p // tile

    grid = (B, n_tiles)
    out = pl.pallas_call(
        _ffn_kernel,
        out_shape=jax.ShapeDtypeStruct((B, n_p, D), x.dtype),
        grid_spec=pltpu.PrefetchScalarGridSpec(
            num_scalar_prefetch=0,
            grid=grid,
            in_specs=[
                pl.BlockSpec((1, tile, D), lambda b, i: (b, i, 0)),   # x rows
                pl.BlockSpec((1, 1, D), lambda b, i: (b, 0, 0)),      # scale'
                pl.BlockSpec((1, 1, D), lambda b, i: (b, 0, 0)),      # shift'
                pl.BlockSpec((D, inner), lambda b, i: (0, 0)),        # w1 (resident)
                pl.BlockSpec((1, inner), lambda b, i: (0, 0)),        # b1
                pl.BlockSpec((inner, D), lambda b, i: (0, 0)),        # w2 (resident)
                pl.BlockSpec((1, D), lambda b, i: (0, 0)),            # b2
            ],
            out_specs=pl.BlockSpec((1, tile, D), lambda b, i: (b, i, 0)),
        ),
        compiler_params=pltpu.CompilerParams(
            dimension_semantics=("parallel", "parallel"),
            # 128 MiB physical on v5e/v6e; on v7x (64 MiB/TC) cap ~48-56 MiB
            # and stream weights (inner-dim grid axis) for large D/inner.
            vmem_limit_bytes=64 * 1024 * 1024),
    )(x, scale_eff, shift_eff, w1, b1, w2, b2)

    return out[:, :N, :]


def feed_forward_reference(x, scale, shift, gamma, beta, w1, b1, w2, b2):
    """Pure-JAX f32 reference mirroring the PyTorch forward."""
    mean = jnp.mean(x, axis=-1, keepdims=True)
    var = jnp.mean((x - mean) ** 2, axis=-1, keepdims=True)
    xn = (x - mean) / jnp.sqrt(var + 1e-5) * gamma + beta
    xn = xn * (scale + 1.0) + shift
    h = xn @ w1 + b1
    h = 0.5 * h * (1.0 + jax.lax.erf(h / jnp.sqrt(2.0)))
    return h @ w2 + b2


if __name__ == "__main__":
    # Small shapes consistent with the module.
    B, N, D = 2, 8, 32           # batch, tokens, dim
    mult = 4
    inner = D * mult             # 128
    time_cond_dim = 16

    key = jax.random.PRNGKey(0)
    k = jax.random.split(key, 8)

    x = jax.random.normal(k[0], (B, N, D), dtype=jnp.float32)
    time = jax.random.normal(k[1], (B, time_cond_dim), dtype=jnp.float32)

    # LayerNorm params: gamma=ones (Parameter), beta=zeros (buffer).
    gamma = jnp.ones((1, D), dtype=jnp.float32)
    beta = jnp.zeros((1, D), dtype=jnp.float32)

    # net: Linear(D, inner) -> GELU -> Linear(inner, D). Weights stored (in, out).
    w1 = jax.random.normal(k[2], (D, inner), dtype=jnp.float32) * 0.02
    b1 = jax.random.normal(k[3], (1, inner), dtype=jnp.float32) * 0.02
    w2 = jax.random.normal(k[4], (inner, D), dtype=jnp.float32) * 0.02
    b2 = jax.random.normal(k[5], (1, D), dtype=jnp.float32) * 0.02

    # Hoisted (setup-time) bf16 cast of the MXU weights — not in the hot path.
    w1_bf16 = w1.astype(jnp.bfloat16)
    w2_bf16 = w2.astype(jnp.bfloat16)

    # time_cond: SiLU -> Linear(time_cond_dim, 2*D) -> 'b d -> b 1 d'.
    # (PyTorch zero-inits these; nonzero values exercise the modulation path.)
    wt = jax.random.normal(k[6], (time_cond_dim, 2 * D), dtype=jnp.float32) * 0.02
    bt = jax.random.normal(k[7], (1, 2 * D), dtype=jnp.float32) * 0.02

    # --- glue: time conditioning projection (plain JAX, tiny) ---
    t = jax.nn.silu(time) @ wt + bt                     # (B, 2*D)
    scale, shift = jnp.split(t, 2, axis=-1)             # each (B, D)
    scale = scale[:, None, :]                           # (B, 1, D)
    shift = shift[:, None, :]

    out = feed_forward(x, scale, shift, gamma, beta, w1_bf16, b1, w2_bf16, b2)
    out = jax.block_until_ready(out)

    ref = feed_forward_reference(x, scale, shift, gamma, beta, w1, b1, w2, b2)
    assert out.shape == (B, N, D)
    # bf16 MXU operands (f32 accumulation) => slightly looser tolerance.
    assert jnp.allclose(out, ref, atol=2e-2, rtol=2e-2), "mismatch vs reference"

    print("KERNEL_OK")
</pallas_src>

<mosaic_0001>
module attributes {stable_mosaic.version = 11 : i64} {
  func.func @_ffn_kernel(%arg0: i32, %arg1: i32, %arg2: memref<1x8x32xf32, #tpu.memory_space<vmem>>, %arg3: memref<1x1x32xf32, #tpu.memory_space<vmem>>, %arg4: memref<1x1x32xf32, #tpu.memory_space<vmem>>, %arg5: memref<32x128xbf16, #tpu.memory_space<vmem>>, %arg6: memref<1x128xf32, #tpu.memory_space<vmem>>, %arg7: memref<128x32xbf16, #tpu.memory_space<vmem>>, %arg8: memref<1x32xf32, #tpu.memory_space<vmem>>, %arg9: memref<1x8x32xf32, #tpu.memory_space<vmem>>) attributes {dimension_semantics = [#tpu.dimension_semantics<parallel>, #tpu.dimension_semantics<parallel>], iteration_bounds = array<i64: 2, 1>, scalar_prefetch = 0 : i64, scratch_operands = 0 : i64, tpu.core_type = #tpu.core_type<tc>, window_params = [{transform_indices = @transform_0, window_bounds = array<i64: 1, 8, 32>}, {transform_indices = @transform_1, window_bounds = array<i64: 1, 1, 32>}, {transform_indices = @transform_2, window_bounds = array<i64: 1, 1, 32>}, {pipeline_mode = #tpu.pipeline_mode<synchronous>, transform_indices = @transform_3, window_bounds = array<i64: 32, 128>}, {pipeline_mode = #tpu.pipeline_mode<synchronous>, transform_indices = @transform_4, window_bounds = array<i64: 1, 128>}, {pipeline_mode = #tpu.pipeline_mode<synchronous>, transform_indices = @transform_5, window_bounds = array<i64: 128, 32>}, {pipeline_mode = #tpu.pipeline_mode<synchronous>, transform_indices = @transform_6, window_bounds = array<i64: 1, 32>}, {transform_indices = @transform_7, window_bounds = array<i64: 1, 8, 32>}]} {
    %c0 = arith.constant 0 : index
    %c0_0 = arith.constant 0 : index
    %c0_1 = arith.constant 0 : index
    %0 = vector.load %arg2[%c0, %c0_0, %c0_1] : memref<1x8x32xf32, #tpu.memory_space<vmem>>, vector<1x8x32xf32>
    %1 = vector.shape_cast %0 : vector<1x8x32xf32> to vector<8x32xf32>
    %cst = arith.constant dense<0.000000e+00> : vector<8xf32>
    %2 = vector.multi_reduction <add>, %1, %cst [1] : vector<8x32xf32> to vector<8xf32>
    %3 = vector.shape_cast %2 : vector<8xf32> to vector<8x1xf32>
    %4 = arith.mulf %1, %1 : vector<8x32xf32>
    %cst_2 = arith.constant dense<0.000000e+00> : vector<8xf32>
    %5 = vector.multi_reduction <add>, %4, %cst_2 [1] : vector<8x32xf32> to vector<8xf32>
    %6 = vector.shape_cast %5 : vector<8xf32> to vector<8x1xf32>
    %cst_3 = arith.constant 3.125000e-02 : f32
    %7 = vector.broadcast %cst_3 : f32 to vector<8x1xf32>
    %8 = arith.mulf %3, %7 : vector<8x1xf32>
    %cst_4 = arith.constant 3.125000e-02 : f32
    %9 = vector.broadcast %cst_4 : f32 to vector<8x1xf32>
    %10 = arith.mulf %6, %9 : vector<8x1xf32>
    %11 = arith.mulf %8, %8 : vector<8x1xf32>
    %12 = arith.subf %10, %11 : vector<8x1xf32>
    %cst_5 = arith.constant 0.000000e+00 : f32
    %13 = vector.broadcast %cst_5 : f32 to vector<8x1xf32>
    %14 = arith.maximumf %12, %13 : vector<8x1xf32>
    %15 = vector.broadcast %8 : vector<8x1xf32> to vector<8x32xf32>
    %16 = arith.subf %1, %15 : vector<8x32xf32>
    %cst_6 = arith.constant 9.99999974E-6 : f32
    %17 = vector.broadcast %cst_6 : f32 to vector<8x1xf32>
    %18 = arith.addf %14, %17 : vector<8x1xf32>
    %19 = math.rsqrt %18 : vector<8x1xf32>
    %20 = vector.broadcast %19 : vector<8x1xf32> to vector<8x32xf32>
    %21 = arith.mulf %16, %20 : vector<8x32xf32>
    %c0_7 = arith.constant 0 : index
    %c0_8 = arith.constant 0 : index
    %c0_9 = arith.constant 0 : index
    %22 = vector.load %arg3[%c0_7, %c0_8, %c0_9] : memref<1x1x32xf32, #tpu.memory_space<vmem>>, vector<1x1x32xf32>
    %23 = vector.shape_cast %22 : vector<1x1x32xf32> to vector<1x32xf32>
    %24 = vector.broadcast %23 : vector<1x32xf32> to vector<8x32xf32>
    %25 = arith.mulf %21, %24 : vector<8x32xf32>
    %c0_10 = arith.constant 0 : index
    %c0_11 = arith.constant 0 : index
    %c0_12 = arith.constant 0 : index
    %26 = vector.load %arg4[%c0_10, %c0_11, %c0_12] : memref<1x1x32xf32, #tpu.memory_space<vmem>>, vector<1x1x32xf32>
    %27 = vector.shape_cast %26 : vector<1x1x32xf32> to vector<1x32xf32>
    %28 = vector.broadcast %27 : vector<1x32xf32> to vector<8x32xf32>
    %29 = arith.addf %25, %28 : vector<8x32xf32>
    %30 = arith.truncf %29 : vector<8x32xf32> to vector<8x32xbf16>
    %c0_13 = arith.constant 0 : index
    %c0_14 = arith.constant 0 : index
    %31 = vector.load %arg5[%c0_13, %c0_14] : memref<32x128xbf16, #tpu.memory_space<vmem>>, vector<32x128xbf16>
    %cst_15 = arith.constant dense<0.000000e+00> : vector<8x128xf32>
    %32 = tpu.matmul %30, %31, %cst_15 {dimension_numbers = #tpu.dot_dimension_numbers<[1], [0], [0], [1], [0, 0, 1, 1], [], []>} : vector<8x32xbf16>, vector<32x128xbf16>, vector<8x128xf32> -> vector<8x128xf32>
    %c0_16 = arith.constant 0 : index
    %c0_17 = arith.constant 0 : index
    %33 = vector.load %arg6[%c0_16, %c0_17] : memref<1x128xf32, #tpu.memory_space<vmem>>, vector<1x128xf32>
    %34 = vector.broadcast %33 : vector<1x128xf32> to vector<8x128xf32>
    %35 = arith.addf %32, %34 : vector<8x128xf32>
    %cst_18 = arith.constant 5.000000e-01 : f32
    %36 = vector.broadcast %cst_18 : f32 to vector<8x128xf32>
    %37 = arith.mulf %36, %35 : vector<8x128xf32>
    %cst_19 = arith.constant 0.707106769 : f32
    %38 = vector.broadcast %cst_19 : f32 to vector<8x128xf32>
    %39 = arith.mulf %35, %38 : vector<8x128xf32>
    %40 = math.erf %39 : vector<8x128xf32>
    %cst_20 = arith.constant 1.000000e+00 : f32
    %41 = vector.broadcast %cst_20 : f32 to vector<8x128xf32>
    %42 = arith.addf %41, %40 : vector<8x128xf32>
    %43 = arith.mulf %37, %42 : vector<8x128xf32>
    %44 = arith.truncf %43 : vector<8x128xf32> to vector<8x128xbf16>
    %c0_21 = arith.constant 0 : index
    %c0_22 = arith.constant 0 : index
    %45 = vector.load %arg7[%c0_21, %c0_22] : memref<128x32xbf16, #tpu.memory_space<vmem>>, vector<128x32xbf16>
    %cst_23 = arith.constant dense<0.000000e+00> : vector<8x32xf32>
    %46 = tpu.matmul %44, %45, %cst_23 {dimension_numbers = #tpu.dot_dimension_numbers<[1], [0], [0], [1], [0, 0, 1, 1], [], []>} : vector<8x128xbf16>, vector<128x32xbf16>, vector<8x32xf32> -> vector<8x32xf32>
    %c0_24 = arith.constant 0 : index
    %c0_25 = arith.constant 0 : index
    %47 = vector.load %arg8[%c0_24, %c0_25] : memref<1x32xf32, #tpu.memory_space<vmem>>, vector<1x32xf32>
    %48 = vector.broadcast %47 : vector<1x32xf32> to vector<8x32xf32>
    %49 = arith.addf %46, %48 : vector<8x32xf32>
    %c0_26 = arith.constant 0 : index
    %c0_27 = arith.constant 0 : index
    %c0_28 = arith.constant 0 : index
    %50 = vector.load %arg9[%c0_26, %c0_27, %c0_28] : memref<1x8x32xf32, #tpu.memory_space<vmem>>, vector<1x8x32xf32>
    %51 = vector.shape_cast %50 : vector<1x8x32xf32> to vector<8x32xf32>
    %52 = vector.shape_cast %49 : vector<8x32xf32> to vector<1x8x32xf32>
    tpu.vector_store %arg9[%c0_26, %c0_27, %c0_28], %52 {strides = array<i32>} : memref<1x8x32xf32, #tpu.memory_space<vmem>>, vector<1x8x32xf32>,
    return
  }
  func.func @transform_0(%arg0: i32, %arg1: i32) -> (i32, i32, i32) {
    %c0_i32 = arith.constant 0 : i32
    %c0_i32_0 = arith.constant 0 : i32
    return %arg0, %arg1, %c0_i32 : i32, i32, i32
  }
  func.func @transform_1(%arg0: i32, %arg1: i32) -> (i32, i32, i32) {
    %c0_i32 = arith.constant 0 : i32
    %c0_i32_0 = arith.constant 0 : i32
    %c0_i32_1 = arith.constant 0 : i32
    return %arg0, %c0_i32, %c0_i32_0 : i32, i32, i32
  }
  func.func @transform_2(%arg0: i32, %arg1: i32) -> (i32, i32, i32) {
    %c0_i32 = arith.constant 0 : i32
    %c0_i32_0 = arith.constant 0 : i32
    %c0_i32_1 = arith.constant 0 : i32
    return %arg0, %c0_i32, %c0_i32_0 : i32, i32, i32
  }
  func.func @transform_3(%arg0: i32, %arg1: i32) -> (i32, i32) {
    %c0_i32 = arith.constant 0 : i32
    %c0_i32_0 = arith.constant 0 : i32
    %c0_i32_1 = arith.constant 0 : i32
    return %c0_i32, %c0_i32_0 : i32, i32
  }
  func.func @transform_4(%arg0: i32, %arg1: i32) -> (i32, i32) {
    %c0_i32 = arith.constant 0 : i32
    %c0_i32_0 = arith.constant 0 : i32
    %c0_i32_1 = arith.constant 0 : i32
    return %c0_i32, %c0_i32_0 : i32, i32
  }
  func.func @transform_5(%arg0: i32, %arg1: i32) -> (i32, i32) {
    %c0_i32 = arith.constant 0 : i32
    %c0_i32_0 = arith.constant 0 : i32
    %c0_i32_1 = arith.constant 0 : i32
    return %c0_i32, %c0_i32_0 : i32, i32
  }
  func.func @transform_6(%arg0: i32, %arg1: i32) -> (i32, i32) {
    %c0_i32 = arith.constant 0 : i32
    %c0_i32_0 = arith.constant 0 : i32
    %c0_i32_1 = arith.constant 0 : i32
    return %c0_i32, %c0_i32_0 : i32, i32
  }
  func.func @transform_7(%arg0: i32, %arg1: i32) -> (i32, i32, i32) {
    %c0_i32 = arith.constant 0 : i32
    %c0_i32_0 = arith.constant 0 : i32
    return %arg0, %arg1, %c0_i32 : i32, i32, i32
  }
}

</mosaic_0001>

<bundles_post_ra>
// kernel: feed_forward.1
= control target key start
LH: loop header
LB: loop body
LE: loop exit
PB: predicated region body
PF: predicated region fallthrough
CT: control target
= control target key end

     0   :  { %12 = vsyncpa [#allocation3], 0  ;;  %s1071_s0 = inlined_call_operand.vmem [shape: f32[2,8,32], index: 0, kind: input, shape index: {}]   ;;  %s1072_s1 = inlined_call_operand.vmem [shape: f32[2,1,32], index: 1, kind: input, shape index: {}]   ;;  %s1073_s2 = inlined_call_operand.vmem [shape: f32[2,1,32], index: 2, kind: input, shape index: {}]   ;;  %s1074_s3 = inlined_call_operand.vmem [shape: bf16[32,128], index: 3, kind: input, shape index: {}]   ;;  %s1075_s4 = inlined_call_operand.vmem [shape: f32[1,128], index: 4, kind: input, shape index: {}]   ;;  %s1076_s5 = inlined_call_operand.vmem [shape: bf16[128,32], index: 5, kind: input, shape index: {}]   ;;  %s1077_s6 = inlined_call_operand.vmem [shape: f32[1,32], index: 6, kind: input, shape index: {}]   ;;  %s1078_s7 = inlined_call_operand.hbm [shape: f32[2,8,32], index: 7, kind: output, shape index: {}]  }
   0x1   :  { %14 = vsyncpa [#allocation3 + $0x1], 0  ;;  %s909_s24 = smov 0   ;;  %s911_s25 = smov 0  }
   0x2   :  { %s913_s26 = smov 0   ;;  %s915_s27 = smov 0  }
   0x3   :  { %s917_s28 = smov 0   ;;  %s919_s29 = smov 0  }
   0x4 LB: > { %s651_s30 = sadd.s32 4294967295, %s864_s29   ;;  %s652_s8 = sadd.s32 4294967294, %s864_s29   ;;  %s864_s29 = sphi %s919_s29, %s20_s29   ;;  %s860_s28 = sphi %s917_s28, %s1085_s28   ;;  %s856_s27 = sphi %s915_s27, %s1084_s27   ;;  %s852_s26 = sphi %s913_s26, %s1083_s26   ;;  %s848_s25 = sphi %s911_s25, %s1082_s25   ;;  %s844_s24 = sphi %s909_s24, %s1081_s24  }
   0x5   : > { %s32_s9 = sadd.s32 1, %s860_s28  ;;  %s205_s10 = sadd.s32 1, %s852_s26 }
   0x6   : > { %p34_p0 = scmp.ge.s32.totalorder %s32_s9, 2  ;;  %p215_p1 = scmp.ne.s32.totalorder %s852_s26, %s848_s25 }
   0x7   : > { %p216_p2 = scmp.eq.s32.totalorder %s651_s30, 1  ;;  %p221_p3 = scmp.ne.s32.totalorder %s848_s25, %s844_s24 }
   0x8   : > { %s1087_s9 = smov (%p34_p0, %s32_s9), 0  ;;  %p222_p5 = scmp.eq.s32.totalorder %s652_s8, 1 }
   0x9   : > { %p949_p4 = por %p216_p2, %p215_p1  ;;  %s200_s12 = ssub.s32 %s860_s28, %s1087_s9 }
   0xa   : > { %p655_p6 = scmp.ge.s32.totalorder %s864_s29, 1  ;;  %p203_p7 = scmp.eq.s32.totalorder %s200_s12, 0 }
   0xb   : > { %p956_p8 = por %p222_p5, %p221_p3  ;;  %p274_p9 = scmp.lt.s32.totalorder %s864_s29, 3 }
   0xc   : > { %s962_s14 = scalar_select %p203_p7, %s852_s26, %s205_s10  }
   0xd   : > { %p275_p10 = pnand %p655_p6, %p274_p9 }
   0xe   : > { %p314_p11 = scmp.lt.s32.totalorder (!%p275_p10), %s856_s27, 1  ;;  %s311_s23 = sand.u32 (!%p275_p10), 1, %s848_s25  }
   0xf   : > { %278 = sbr.rel (%p275_p10) target bundleno = 624 (0x270), region = 48  ;;  %s656_s30 = sshll.u32 (!%p275_p10), %s311_s23, 3 }
  0x10   : > { %s674_s10 = sshll.u32 (!%p275_p10), %s856_s27, 7  ;;  %s313_s12 = scalar_lea.vmem (!%p275_p10), [#allocation2], %s656_s30 }
  0x11   : > { %s548_s20 = scalar_lea.sflag (!%p275_p10), [#allocation3], %s311_s23 }
  0x14   : > { %s966_s15 = scalar_select %p314_p11, %s856_s27, 1  ;;  %vm329_vm0 = vcmask 261120   ;;  %v774_v4 = vld [vmem:[%s1074_s3 + $0x8] sm:$0xff]   ;;  %v866_v5 = vmov 0.0   ;;  %vm867_vm1 = vmmov 0   ;;  %v775_v6 = vld [vmem:[%s1074_s3] sm:$0xff]  }
  0x15   : > { %689 = vmatprep.subr.bf16.mxu0 %v866_v5  ;;  %693 = vmatprep.mubr.msk.bf16.mxu0 %vm867_vm1, %v866_v5  ;;  %v776_v7 = vld [vmem:[%s1076_s5 + $0x38] sm:$0xff]   ;;  %v777_v8 = vld [vmem:[%s1076_s5 + $0x30] sm:$0xff]   ;;  %v778_v25 = vld [vmem:[%s1076_s5 + $0x28] sm:$0xff]  }
  0x16   : > { %s657_s16 = sshll.u32 %s966_s15, 3  ;;  %690 = vmatpush3.bf16.msra.mxu0 %v774_v4  ;;  %697 = vmatprep.subr.bf16.mxu1 %v866_v5  ;;  %s323_s18 = scalar_lea.vmem %s1072_s1, %s966_s15  ;;  %v779_v26 = vld [vmem:[%s1076_s5 + $0x20] sm:$0xff]   ;;  %v780_v27 = vld [vmem:[%s1076_s5 + $0x18] sm:$0xff]   ;;  %v781_v28 = vld [vmem:[%s1076_s5 + $0x10] sm:$0xff]  }
  0x17   : > { %s320_s19 = scalar_lea.vmem %s1071_s0, %s657_s16  ;;  %691 = vmatprep.subr.bf16.mxu0 %v866_v5  ;;  %713 = vmatprep.mubr.msk.bf16.mxu1 %vm867_vm1, %v866_v5  ;;  %s326_s21 = scalar_lea.vmem %s1073_s2, %s966_s15  ;;  %v658_v19 = vld [vmem:[%s323_s18] ss:$0 sm:$0xff]  ;;  %v782_v29 = vld [vmem:[%s1076_s5 + $0x8] sm:$0xff]  }
  0x18   : > { %v328_v0 = vld [vmem:[%s320_s19] sm:$0xff]  ;;  %698 = vmatpush3.bf16.msra.mxu1 %v776_v7  ;;  %s562_s16 = sshll.u32 %s313_s12, 4  ;;  %s1024_s19 = scalar_lea.hbm %s1078_s7, %s674_s10  ;;  %s1026_s16 = int_to_ptr.vmem [resolvable:$true] %s562_s16 }
  0x19   : > { %v330_v1 = vsel %vm329_vm0, %v328_v0, 0.0  ;;  %v333_v2 = vmul.f32 %v328_v0, %v328_v0  ;;  %699 = vmatprep.subr.bf16.mxu1 %v866_v5  ;;  %v659_v21 = vld [vmem:[%s326_s21] ss:$0 sm:$0xff]  ;;  %s788_s27 = scalar_lea.vmem %s1026_s16, 128  ;;  %s868_s21 = smov [#allocation2]  }
  0x1a   : > { %331 = vadd.xlane.f32.xlu0 %v330_v1  ;;  %692 = vmatpush3.bf16.msra.mxu0 %v775_v6  ;;  %v783_v30 = vld [vmem:[%s1076_s5] sm:$0xff]   ;;  %p789_p12 = scmp.ne.s32.totalorder %s1026_s16, %s788_s27  ;;  %s792_s22 = sshll.u32 %s868_s21, 4  ;;  %s793_s22 = int_to_ptr.vmem [resolvable:$false] %s792_s22 }
  0x1b   : > { %v334_v3 = vsel %vm329_vm0, %v333_v2, 0.0  ;;  %v660_v31 = vld [vmem:[%s1075_s4] ss:$0 sm:$0xff]  ;;  %s794_s30 = scalar_lea.vmem %s793_s22, 256  ;;  %p795_p1 = scmp.lt.s32.totalorder %s1026_s16, %s793_s22 }
  0x1c   : > { %700 = vmatpush3.bf16.msra.mxu1 %v777_v8  ;;  %v664_v43 = vld [vmem:[%s1077_s6] ss:$0 sm:$0xff]  ;;  %p790_p13 = pnand %p789_p12, %p949_p4  ;;  %p796_p2 = scmp.lt.s32.totalorder %s794_s30, %s788_s27 }
  0x1d   : > { %701 = vmatprep.subr.bf16.mxu1 %v866_v5 }
  0x1e   : > { %335 = vadd.xlane.f32.xlu0 %v334_v3  ;;  %p791_p0 = pneg %p790_p13  ;;  %p797_p3 = por %p796_p2, %p795_p1 }
  0x20   : > { %702 = vmatpush3.bf16.msra.mxu1 %v778_v25  ;;  %p798_p5 = pnand %p797_p3, %p791_p0 }
  0x21   : > { %703 = vmatprep.subr.bf16.mxu1 %v866_v5 }
  0x24   : > { %704 = vmatpush3.bf16.msra.mxu1 %v779_v26 }
  0x25   : > { %705 = vmatprep.subr.bf16.mxu1 %v866_v5 }
  0x28   : > { %706 = vmatpush3.bf16.msra.mxu1 %v780_v27 }
  0x29   : > { %707 = vmatprep.subr.bf16.mxu1 %v866_v5 }
  0x2c   : > { %708 = vmatpush3.bf16.msra.mxu1 %v781_v28 }
  0x2d   : > { %709 = vmatprep.subr.bf16.mxu1 %v866_v5 }
  0x30   : > { %710 = vmatpush3.bf16.msra.mxu1 %v782_v29 }
  0x31   : > { %711 = vmatprep.subr.bf16.mxu1 %v866_v5 }
  0x34   : > { %712 = vmatpush3.bf16.msra.mxu1 %v783_v30 }
  0xa3   : > { %v332_v9 = vpop.xlane.xlu0 %331 }
  0xa4   : > { %v337_v10 = vmul.f32 0.03125, %v332_v9 }
  0xa6   : > { %v339_v12 = vmul.f32 %v337_v10, %v337_v10  ;;  %v342_v17 = vsub.f32 %v328_v0, %v337_v10 }
  0xa7   : > { %v336_v11 = vpop.xlane.xlu0 %335 }
  0xa8   : > { %v338_v13 = vmul.f32 0.03125, %v336_v11 }
  0xaa   : > { %v340_v14 = vsub.f32 %v338_v13, %v339_v12 }
  0xac   : > { %v341_v15 = vmax.f32 %v340_v14, 0.0 }
  0xae   : > { %v343_v16 = vadd.f32 1e-05, %v341_v15 }
  0xb0   : > { %784 = vrsqrt.f32 %v343_v16 }
  0xbd   : > { %v785_v18 = vpop.eup %784 }
  0xbe   : > { %v345_v20 = vmul.f32 %v785_v18, %v342_v17 }
  0xc0   : > { %v353_v22 = vmul.f32 %v658_v19, %v345_v20 }
  0xc2   : > { %v361_v23 = vadd.f32 %v659_v21, %v353_v22 }
  0xc4   : > { %v362_v24 = vpack.c.bf16 %v361_v23, %v361_v23 }
  0xc6   : > { %694 = vmatmul.mubr.msk.bf16.vlgmr.msra.gmra.mxu0 %vm329_vm0, %v362_v24 }
 0x186   : > { %v423_v32 = vpop.f32.mrf.mxu0 }
 0x187   : > { %v424_v33 = vadd.f32 %v660_v31, %v423_v32 }
 0x188   : > { %v695_v34 = vpop.f32.mrf.mxu0 }
 0x189   : > { %v430_v35 = vmul.f32 0.70710677, %v424_v33  ;;  %v429_v39 = vmul.f32 0.5, %v424_v33 }
 0x18a   : > { %v426_v36 = vpop.f32.mrf.mxu0 }
 0x18b   : > { %786 = verf.f32 %v430_v35 }
 0x18c   : > { %v696_v37 = vpop.f32.mrf.mxu0 }
 0x198   : > { %v787_v38 = vpop.eup %786 }
 0x199   : > { %v432_v40 = vadd.f32 1.0, %v787_v38 }
 0x19b   : > { %v433_v41 = vmul.f32 %v432_v40, %v429_v39 }
 0x19d   : > { %v434_v42 = vpack.c.bf16 %v433_v41, %v433_v41 }
 0x19f   : > { %714 = vmatmul.mubr.bf16.vlgmr.msra.gmra.mxu1 %v434_v42 }
 0x25f   : > { %v540_v44 = vpop.f32.mrf.mxu1 }
 0x260   : > { %v541_v45 = vadd.f32 %v664_v43, %v540_v44 }
 0x261   : > { %v715_v46 = vpop.f32.mrf.mxu1 }
 0x262   : > { %546 = vst.msk [vmem:[%s313_s12] sm:$0xff] %vm329_vm0, %v541_v45 }
 0x263   : > { %v543_v47 = vpop.f32.mrf.mxu1 }
 0x264   : > { %801 = shalt.err (!%p798_p5)
}
 0x265   : > { %s802_s8 = scalar_lea.hbm %s1024_s19, 128  ;;  %s806_s10 = scalar_lea.hbm %s1078_s7, 256 }
 0x266   : > { %p803_p6 = scmp.ne.s32.totalorder %s1024_s19, %s802_s8  ;;  %p807_p10 = scmp.lt.s32.totalorder %s1024_s19, %s1078_s7 }
 0x267   : > { %p808_p11 = scmp.lt.s32.totalorder %s806_s10, %s802_s8 }
 0x268   : > { %p804_p7 = pnand %p803_p6, %p949_p4 }
 0x269   : > { %p809_p12 = por %p808_p11, %p807_p10 }
 0x26a   : > { %p805_p9 = pneg %p804_p7 }
 0x26c   : > { %p810_p13 = pnand %p809_p12, %p805_p9 }
 0x26e   : > { %813 = shalt.err (!%p810_p13)
}
 0x26f   : > { %717 = dma.vmem_to_hbm [thread:$0]  (%p949_p4), %s1026_s16, 128, %s1024_s19, %s548_s20   ;;  %v716_v48 = vpop.f32.mrf.mxu1 }
 0x270 PF: > { %p723_p0 = scmp.ge.s32.totalorder %s864_s29, 2  ;;  %s574_s18 = sand.u32 1, %s844_s24  }
 0x271   : > { %s575_s27 = scalar_lea.sflag [#allocation3], %s574_s18 }
 0x272   : > { %p720_p1 = pnand %p723_p0, %p956_p8 }
 0x274   : > { %p721_p2 = pneg %p720_p1 }
 0x276   : > { %839 = dma.done.wait (%p721_p2), %s575_s27, 128  }
 0x277   : > { %841 = vsyncadd (%p721_p2), %s575_s27, 4294967168  ;;  %s20_s29 = sadd.s32 1, %s864_s29   ;;  %s1081_s24 = smov %s848_s25 }
 0x278   : > { %p17_p3 = scmp.ge.s32.totalorder %s20_s29, 4   ;;  %s1082_s25 = smov %s852_s26 }
 0x279   : > { %s1083_s26 = smov %s962_s14  ;;  %s1084_s27 = smov %s860_s28 }
 0x27a   : > { %s1085_s28 = smov %s1087_s9  ;;  %19 = sbr.rel (!%p17_p3) target bundleno = 4 (0x4), region = 89 }
 0x27f   :  { %580 = vsyncpa [#allocation3], 1 }
 0x280   :  { %582 = vsyncpa [#allocation3 + $0x1], 1 }

</bundles_post_ra>
